<compile_context>
chip_gen: v5e
topology: v5e:2x2
jax: 0.10.0
libtpu: 0.0.40
codegen_flags: <defaults>
</compile_context>

<pallas_src>
import functools
import math

import jax
import jax.numpy as jnp
from jax.experimental import pallas as pl
from jax.experimental.pallas import tpu as pltpu

NUM_TIMESTEPS = 81
NUM_COEFFS = 13 * 3                        # 39
FEATURE_DIM = NUM_TIMESTEPS * NUM_COEFFS   # 3159

_MAX_TILE_B = 512    # 512*3159*4 ≈ 6.5 MiB per x tile; 2x buffered ≈ 13 MiB.
_MIN_SPLIT_B = 256   # force >=2 grid steps above this so v7x uses both TCs.


def _round_up(n, m):
    return (n + m - 1) // m * m


def prepare_prototypes(prototypes):
    """One-time (init) preprocessing of the prototype layer.

    prototypes: (K, D) float32.
    Returns:
      p_t  : (D, K_pad) float32 -- (-2 * P)^T, class axis padded to 128 lanes.
      p_sq : (1, K_pad) float32 -- ||p_k||^2 per class (0 for padded lanes).
    """
    k, d = prototypes.shape
    k_pad = _round_up(k, 128)
    p = prototypes.astype(jnp.float32)
    p_sq = jnp.sum(p * p, axis=1)                                        # (K,)
    # Fold the -2 of ||x-p||^2 = ||x||^2 + ||p||^2 - 2 x.p into the weights.
    p_t = jnp.zeros((d, k_pad), jnp.float32).at[:, :k].set(-2.0 * p.T)   # (D, Kp)
    p_sq_p = jnp.zeros((1, k_pad), jnp.float32).at[0, :k].set(p_sq)      # (1, Kp)
    return p_t, p_sq_p


def _prototype_kernel(x_ref, pt_ref, psq_ref, y_ref):
    """One batch tile: squared distances to all prototypes.

    x_ref  : (tile_b, D)     f32 VMEM (pipelined)
    pt_ref : (D, K_pad)      f32 VMEM (resident, already scaled by -2)
    psq_ref: (1, K_pad)      f32 VMEM (resident)
    y_ref  : (tile_b, K_pad) f32 VMEM out (lane-dense)
    """
    x = x_ref[...]                                              # (tb, D)
    x_sq = jnp.sum(x * x, axis=1, keepdims=True)                # (tb, 1)  VPU/XLU
    xp = jax.lax.dot_general(
        x, pt_ref[...],
        dimension_numbers=(((1,), (0,)), ((), ())),
        preferred_element_type=jnp.float32)                     # (tb, Kp) MXU
    # ||x||^2 + ||p||^2 - 2 x.p ; clamp cancellation at 0.
    y_ref[...] = jnp.maximum(x_sq + psq_ref[...] + xp, 0.0)


@functools.partial(jax.jit, static_argnames=("num_classes",))
def one_per_class_prototype_forward(x, p_t, p_sq, *, num_classes):
    """x: (B, 81, 39); p_t: (D, K_pad) f32; p_sq: (1, K_pad) f32.

    Returns (y, y_argmin): y (B, num_classes) f32, y_argmin (B,) int32.
    """
    b = x.shape[0]
    d, k_pad = p_t.shape
    x_flat = x.reshape(b, -1).astype(jnp.float32)
    assert x_flat.shape[1] == d

    # Grid-step count: enough tiles to stay <= _MAX_TILE_B rows, and at least
    # 2 steps once B is big enough to matter (v7x dual-TensorCore sharding).
    n_tiles = max(1, math.ceil(b / _MAX_TILE_B))
    if b > _MIN_SPLIT_B and n_tiles < 2:
        n_tiles = 2
    # Tile derived from B (rounded to 8 sublanes) -> at most a handful of
    # padded rows, never a full extra copy of x.
    tile_b = _round_up(math.ceil(b / n_tiles), 8)
    b_pad = n_tiles * tile_b
    if b_pad != b:
        x_flat = jnp.pad(x_flat, ((0, b_pad - b), (0, 0)))

    y = pl.pallas_call(
        _prototype_kernel,
        grid=(n_tiles,),
        out_shape=jax.ShapeDtypeStruct((b_pad, k_pad), jnp.float32),
        in_specs=[
            pl.BlockSpec((tile_b, d), lambda i: (i, 0)),   # x tile (pipelined)
            pl.BlockSpec((d, k_pad), lambda i: (0, 0)),    # prototypes (resident)
            pl.BlockSpec((1, k_pad), lambda i: (0, 0)),    # ||p||^2 (resident)
        ],
        out_specs=pl.BlockSpec((tile_b, k_pad), lambda i: (i, 0)),
        compiler_params=pltpu.CompilerParams(
            dimension_semantics=("parallel",)),
    )(x_flat, p_t, p_sq)

    y = y[:b, :num_classes]
    # First-occurrence argmin over real classes only (padded rows already
    # sliced off above; padded lanes sliced off too).
    y_argmin = jnp.argmin(y, axis=1).astype(jnp.int32)
    return y, y_argmin


def _reference_forward(x, prototypes):
    b = x.shape[0]
    x_flat = x.reshape(b, -1).astype(jnp.float32)
    diff = x_flat[:, None, :] - prototypes[None, :, :]
    y = jnp.sum(diff * diff, axis=-1)
    return y, jnp.argmin(y, axis=1).astype(jnp.int32)


if __name__ == "__main__":
    num_classes = 10
    batch = 8

    key = jax.random.PRNGKey(0)
    kx, kp = jax.random.split(key)

    # Prototype layer parameters (K, 3159), preprocessed once at "init".
    prototypes = jax.random.normal(
        kp, (num_classes, FEATURE_DIM), dtype=jnp.float32)
    p_t, p_sq = prepare_prototypes(prototypes)

    # Input: (B, num_timesteps, num_coeffs) = (8, 81, 39).
    x = jax.random.normal(
        kx, (batch, NUM_TIMESTEPS, NUM_COEFFS), dtype=jnp.float32)

    y, y_argmin = one_per_class_prototype_forward(
        x, p_t, p_sq, num_classes=num_classes)
    jax.block_until_ready((y, y_argmin))

    y_ref, y_argmin_ref = _reference_forward(x, prototypes)
    assert y.shape == (batch, num_classes)
    assert y_argmin.shape == (batch,)
    assert jnp.allclose(y, y_ref, rtol=1e-4, atol=1e-3)
    assert jnp.array_equal(y_argmin, y_argmin_ref)

    # TODO(synk): PrototypeLoss (module.loss) is not part of forward() and is
    # not implemented here.
    print("KERNEL_OK")
</pallas_src>

<mosaic_0001>
module attributes {stable_mosaic.version = 11 : i64} {
  func.func @_prototype_kernel(%arg0: i32, %arg1: memref<8x3159xf32, #tpu.memory_space<vmem>>, %arg2: memref<3159x128xf32, #tpu.memory_space<vmem>>, %arg3: memref<1x128xf32, #tpu.memory_space<vmem>>, %arg4: memref<8x128xf32, #tpu.memory_space<vmem>>) attributes {dimension_semantics = [#tpu.dimension_semantics<parallel>], iteration_bounds = array<i64: 1>, scalar_prefetch = 0 : i64, scratch_operands = 0 : i64, tpu.core_type = #tpu.core_type<tc>, window_params = [{transform_indices = @transform_0, window_bounds = array<i64: 8, 3159>}, {pipeline_mode = #tpu.pipeline_mode<synchronous>, transform_indices = @transform_1, window_bounds = array<i64: 3159, 128>}, {pipeline_mode = #tpu.pipeline_mode<synchronous>, transform_indices = @transform_2, window_bounds = array<i64: 1, 128>}, {transform_indices = @transform_3, window_bounds = array<i64: 8, 128>}]} {
    %c0 = arith.constant 0 : index
    %c0_0 = arith.constant 0 : index
    %0 = vector.load %arg1[%c0, %c0_0] : memref<8x3159xf32, #tpu.memory_space<vmem>>, vector<8x3159xf32>
    %1 = arith.mulf %0, %0 : vector<8x3159xf32>
    %cst = arith.constant dense<0.000000e+00> : vector<8xf32>
    %2 = vector.multi_reduction <add>, %1, %cst [1] : vector<8x3159xf32> to vector<8xf32>
    %3 = vector.shape_cast %2 : vector<8xf32> to vector<8x1xf32>
    %c0_1 = arith.constant 0 : index
    %c0_2 = arith.constant 0 : index
    %4 = vector.load %arg2[%c0_1, %c0_2] : memref<3159x128xf32, #tpu.memory_space<vmem>>, vector<3159x128xf32>
    %cst_3 = arith.constant dense<0.000000e+00> : vector<8x128xf32>
    %5 = tpu.matmul %0, %4, %cst_3 {dimension_numbers = #tpu.dot_dimension_numbers<[1], [0], [0], [1], [0, 0, 1, 1], [], []>} : vector<8x3159xf32>, vector<3159x128xf32>, vector<8x128xf32> -> vector<8x128xf32>
    %c0_4 = arith.constant 0 : index
    %c0_5 = arith.constant 0 : index
    %6 = vector.load %arg3[%c0_4, %c0_5] : memref<1x128xf32, #tpu.memory_space<vmem>>, vector<1x128xf32>
    %7 = vector.broadcast %3 : vector<8x1xf32> to vector<8x128xf32>
    %8 = vector.broadcast %6 : vector<1x128xf32> to vector<8x128xf32>
    %9 = arith.addf %7, %8 : vector<8x128xf32>
    %10 = arith.addf %9, %5 : vector<8x128xf32>
    %cst_6 = arith.constant 0.000000e+00 : f32
    %11 = vector.broadcast %cst_6 : f32 to vector<8x128xf32>
    %12 = arith.maximumf %10, %11 : vector<8x128xf32>
    %c0_7 = arith.constant 0 : index
    %c0_8 = arith.constant 0 : index
    %13 = vector.load %arg4[%c0_7, %c0_8] : memref<8x128xf32, #tpu.memory_space<vmem>>, vector<8x128xf32>
    tpu.vector_store %arg4[%c0_7, %c0_8], %12 {strides = array<i32>} : memref<8x128xf32, #tpu.memory_space<vmem>>, vector<8x128xf32>,
    return
  }
  func.func @transform_0(%arg0: i32) -> (i32, i32) {
    %c0_i32 = arith.constant 0 : i32
    %c0_i32_0 = arith.constant 0 : i32
    return %arg0, %c0_i32 : i32, i32
  }
  func.func @transform_1(%arg0: i32) -> (i32, i32) {
    %c0_i32 = arith.constant 0 : i32
    %c0_i32_0 = arith.constant 0 : i32
    %c0_i32_1 = arith.constant 0 : i32
    return %c0_i32, %c0_i32_0 : i32, i32
  }
  func.func @transform_2(%arg0: i32) -> (i32, i32) {
    %c0_i32 = arith.constant 0 : i32
    %c0_i32_0 = arith.constant 0 : i32
    %c0_i32_1 = arith.constant 0 : i32
    return %c0_i32, %c0_i32_0 : i32, i32
  }
  func.func @transform_3(%arg0: i32) -> (i32, i32) {
    %c0_i32 = arith.constant 0 : i32
    %c0_i32_0 = arith.constant 0 : i32
    return %arg0, %c0_i32 : i32, i32
  }
}

</mosaic_0001>

<bundles_post_ra>
// kernel: one_per_class_prototype_forward.1
= control target key start
LH: loop header
LB: loop body
LE: loop exit
PB: predicated region body
PF: predicated region fallthrough
CT: control target
= control target key end

     0   :  { %8 = vsyncpa [#allocation3], 0  ;;  %s1300_s0 = inlined_call_operand.vmem [shape: f32[8,3159], index: 0, kind: input, shape index: {}]   ;;  %s1301_s1 = inlined_call_operand.hbm [shape: f32[3159,128], index: 1, kind: input, shape index: {}]   ;;  %s1302_s2 = inlined_call_operand.hbm [shape: f32[1,128], index: 2, kind: input, shape index: {}]   ;;  %s1303_s3 = inlined_call_operand.vmem [shape: f32[8,128], index: 3, kind: output, shape index: {}]  }
   0x1   :  { %s16_s14 = sshll.u32 %s1301_s1, 4  ;;  %s17_s14 = int_to_ptr.hbm [resolvable:$true] %s16_s14 }
   0x2   :  { %9 = vsyncpa [#allocation5], 0  ;;  %s1097_s15 = smov [#allocation2]   ;;  %s30_s19 = sshll.u32 %s1302_s2, 4  ;;  %s31_s19 = int_to_ptr.hbm [resolvable:$true] %s30_s19 }
   0x3   :  { %s18_s16 = sshll.u32 %s1097_s15, 4  ;;  %s1098_s20 = smov 128   ;;  %s19_s16 = int_to_ptr.vmem [resolvable:$true] %s18_s16 }
   0x4   :  { %s1099_s21 = smov 8   ;;  %s1100_s22 = smov [#allocation4]  }
   0x5   :  { %24 = dma.hbm_to_vmem [thread:$0]  %s17_s14, 50560, %s19_s16, [#allocation3], %s1098_s20, %s1098_s20, %s1099_s21  }
   0x6   :  { %s32_s23 = sshll.u32 %s1100_s22, 4  ;;  %s33_s23 = int_to_ptr.vmem [resolvable:$true] %s32_s23 }
   0x7   :  { %35 = dma.hbm_to_vmem [thread:$0]  %s31_s19, 16, %s33_s23, [#allocation5]  }
   0x8   :  { %1093 = dma.done.wait [#allocation3], 50560  }
   0x9   :  { %1094 = vsyncadd [#allocation3], 4294916736 }
   0xa   :  { %1095 = dma.done.wait [#allocation5], 16  }
   0xb   :  { %1096 = vsyncadd [#allocation5], 4294967280  ;;  %v137_v0 = vld [vmem:[#allocation2 + $0x78] sm:$0xff]  ;;  %v136_v2 = vld [vmem:[#allocation2 + $0x70] sm:$0xff]  ;;  %vm117_vm0 = vcmask 711680   ;;  %vm520_vm1 = vcmask 1046528  }
   0xc   :  { %v169_v1 = vld [vmem:[#allocation2 + $0x178] sm:$0xff]  ;;  %524 = vmatpush.msra.mxu0 %v137_v0  ;;  %v168_v4 = vld [vmem:[#allocation2 + $0x170] sm:$0xff]  ;;  %v135_v6 = vld [vmem:[#allocation2 + $0x68] sm:$0xff] }
   0xd   :  { %564 = vmatpush.msra.mxu2 %v169_v1  ;;  %v153_v3 = vld [vmem:[#allocation2 + $0xf8] sm:$0xff]  ;;  %v152_v7 = vld [vmem:[#allocation2 + $0xf0] sm:$0xff]  ;;  %v167_v8 = vld [vmem:[#allocation2 + $0x168] sm:$0xff] }
   0xe   :  { %v185_v5 = vld [vmem:[#allocation2 + $0x1f8] sm:$0xff]  ;;  %544 = vmatpush.msra.mxu1 %v153_v3  ;;  %525 = vmatpush.msra.mxu0 %v136_v2  ;;  %v184_v9 = vld [vmem:[#allocation2 + $0x1f0] sm:$0xff]  ;;  %v151_v10 = vld [vmem:[#allocation2 + $0xe8] sm:$0xff] }
   0xf   :  { %584 = vmatpush.msra.mxu3 %v185_v5  ;;  %565 = vmatpush.msra.mxu2 %v168_v4  ;;  %v134_v11 = vld [vmem:[#allocation2 + $0x60] sm:$0xff]  ;;  %v183_v13 = vld [vmem:[#allocation2 + $0x1e8] sm:$0xff]  ;;  %v133_v16 = vld [vmem:[#allocation2 + $0x58] sm:$0xff] }
  0x10   :  { %545 = vmatpush.msra.mxu1 %v152_v7  ;;  %v166_v12 = vld [vmem:[#allocation2 + $0x160] sm:$0xff]  ;;  %526 = vmatpush.msra.mxu0 %v135_v6  ;;  %v165_v17 = vld [vmem:[#allocation2 + $0x158] sm:$0xff]  ;;  %v132_v20 = vld [vmem:[#allocation2 + $0x50] sm:$0xff] }
  0x11   :  { %585 = vmatpush.msra.mxu3 %v184_v9  ;;  %566 = vmatpush.msra.mxu2 %v167_v8  ;;  %v150_v14 = vld [vmem:[#allocation2 + $0xe0] sm:$0xff]  ;;  %v149_v18 = vld [vmem:[#allocation2 + $0xd8] sm:$0xff]  ;;  %v164_v21 = vld [vmem:[#allocation2 + $0x150] sm:$0xff] }
  0x12   :  { %v182_v15 = vld [vmem:[#allocation2 + $0x1e0] sm:$0xff]  ;;  %546 = vmatpush.msra.mxu1 %v151_v10  ;;  %527 = vmatpush.msra.mxu0 %v134_v11  ;;  %v181_v19 = vld [vmem:[#allocation2 + $0x1d8] sm:$0xff]  ;;  %v148_v22 = vld [vmem:[#allocation2 + $0xd0] sm:$0xff] }
  0x13   :  { %586 = vmatpush.msra.mxu3 %v183_v13  ;;  %567 = vmatpush.msra.mxu2 %v166_v12  ;;  %v180_v23 = vld [vmem:[#allocation2 + $0x1d0] sm:$0xff]  ;;  %v131_v24 = vld [vmem:[#allocation2 + $0x48] sm:$0xff]  ;;  %v130_v28 = vld [vmem:[#allocation2 + $0x40] sm:$0xff] }
  0x14   :  { %547 = vmatpush.msra.mxu1 %v150_v14  ;;  %528 = vmatpush.msra.mxu0 %v133_v16  ;;  %v163_v25 = vld [vmem:[#allocation2 + $0x148] sm:$0xff]  ;;  %v162_v29 = vld [vmem:[#allocation2 + $0x140] sm:$0xff]  ;;  %v129_v32 = vld [vmem:[#allocation2 + $0x38] sm:$0xff] }
  0x15   :  { %587 = vmatpush.msra.mxu3 %v182_v15  ;;  %568 = vmatpush.msra.mxu2 %v165_v17  ;;  %v147_v26 = vld [vmem:[#allocation2 + $0xc8] sm:$0xff]  ;;  %v146_v30 = vld [vmem:[#allocation2 + $0xc0] sm:$0xff]  ;;  %v161_v33 = vld [vmem:[#allocation2 + $0x138] sm:$0xff] }
  0x16   :  { %548 = vmatpush.msra.mxu1 %v149_v18  ;;  %529 = vmatpush.msra.mxu0 %v132_v20  ;;  %v179_v27 = vld [vmem:[#allocation2 + $0x1c8] sm:$0xff]  ;;  %v178_v31 = vld [vmem:[#allocation2 + $0x1c0] sm:$0xff]  ;;  %v145_v34 = vld [vmem:[#allocation2 + $0xb8] sm:$0xff] }
  0x17   :  { %588 = vmatpush.msra.mxu3 %v181_v19  ;;  %569 = vmatpush.msra.mxu2 %v164_v21  ;;  %v177_v35 = vld [vmem:[#allocation2 + $0x1b8] sm:$0xff]  ;;  %v128_v36 = vld [vmem:[#allocation2 + $0x30] sm:$0xff]  ;;  %v127_v40 = vld [vmem:[#allocation2 + $0x28] sm:$0xff] }
  0x18   :  { %549 = vmatpush.msra.mxu1 %v148_v22  ;;  %530 = vmatpush.msra.mxu0 %v131_v24  ;;  %v160_v37 = vld [vmem:[#allocation2 + $0x130] sm:$0xff]  ;;  %v159_v41 = vld [vmem:[#allocation2 + $0x128] sm:$0xff]  ;;  %v126_v44 = vld [vmem:[#allocation2 + $0x20] sm:$0xff] }
  0x19   :  { %589 = vmatpush.msra.mxu3 %v180_v23  ;;  %570 = vmatpush.msra.mxu2 %v163_v25  ;;  %v144_v38 = vld [vmem:[#allocation2 + $0xb0] sm:$0xff]  ;;  %v143_v42 = vld [vmem:[#allocation2 + $0xa8] sm:$0xff]  ;;  %v158_v45 = vld [vmem:[#allocation2 + $0x120] sm:$0xff] }
  0x1a   :  { %550 = vmatpush.msra.mxu1 %v147_v26  ;;  %531 = vmatpush.msra.mxu0 %v130_v28  ;;  %v176_v39 = vld [vmem:[#allocation2 + $0x1b0] sm:$0xff]  ;;  %v175_v43 = vld [vmem:[#allocation2 + $0x1a8] sm:$0xff]  ;;  %v142_v46 = vld [vmem:[#allocation2 + $0xa0] sm:$0xff] }
  0x1b   :  { %590 = vmatpush.msra.mxu3 %v179_v27  ;;  %571 = vmatpush.msra.mxu2 %v162_v29  ;;  %v174_v47 = vld [vmem:[#allocation2 + $0x1a0] sm:$0xff]  ;;  %v125_v48 = vld [vmem:[#allocation2 + $0x18] sm:$0xff]  ;;  %v124_v52 = vld [vmem:[#allocation2 + $0x10] sm:$0xff] }
  0x1c   :  { %551 = vmatpush.msra.mxu1 %v146_v30  ;;  %532 = vmatpush.msra.mxu0 %v129_v32  ;;  %v157_v49 = vld [vmem:[#allocation2 + $0x118] sm:$0xff]  ;;  %v156_v53 = vld [vmem:[#allocation2 + $0x110] sm:$0xff]  ;;  %v123_v56 = vld [vmem:[#allocation2 + $0x8] sm:$0xff] }
  0x1d   :  { %591 = vmatpush.msra.mxu3 %v178_v31  ;;  %572 = vmatpush.msra.mxu2 %v161_v33  ;;  %v141_v50 = vld [vmem:[#allocation2 + $0x98] sm:$0xff]  ;;  %v140_v54 = vld [vmem:[#allocation2 + $0x90] sm:$0xff]  ;;  %v155_v57 = vld [vmem:[#allocation2 + $0x108] sm:$0xff] }
  0x1e   :  { %552 = vmatpush.msra.mxu1 %v145_v34  ;;  %533 = vmatpush.msra.mxu0 %v128_v36  ;;  %v173_v51 = vld [vmem:[#allocation2 + $0x198] sm:$0xff]  ;;  %v172_v55 = vld [vmem:[#allocation2 + $0x190] sm:$0xff]  ;;  %v139_v58 = vld [vmem:[#allocation2 + $0x88] sm:$0xff] }
  0x1f   :  { %592 = vmatpush.msra.mxu3 %v177_v35  ;;  %573 = vmatpush.msra.mxu2 %v160_v37  ;;  %v171_v59 = vld [vmem:[#allocation2 + $0x188] sm:$0xff]  ;;  %v122_v60 = vld [vmem:[#allocation2] sm:$0xff]  ;;  %v201_v62 = vld [vmem:[#allocation2 + $0x278] sm:$0xff] }
  0x20   :  { %553 = vmatpush.msra.mxu1 %v144_v38  ;;  %534 = vmatpush.msra.mxu0 %v127_v40  ;;  %v154_v61 = vld [vmem:[#allocation2 + $0x100] sm:$0xff]  ;;  %v233_v63 = vld [vmem:[#allocation2 + $0x378] sm:$0xff]  ;;  %v200_v2 = vld [vmem:[#allocation2 + $0x270] sm:$0xff] }
  0x21   :  { %593 = vmatpush.msra.mxu3 %v176_v39  ;;  %574 = vmatpush.msra.mxu2 %v159_v41  ;;  %v138_v0 = vld [vmem:[#allocation2 + $0x80] sm:$0xff]  ;;  %v217_v3 = vld [vmem:[#allocation2 + $0x2f8] sm:$0xff]  ;;  %v232_v4 = vld [vmem:[#allocation2 + $0x370] sm:$0xff] }
  0x22   :  { %554 = vmatpush.msra.mxu1 %v143_v42  ;;  %535 = vmatpush.msra.mxu0 %v126_v44  ;;  %v170_v1 = vld [vmem:[#allocation2 + $0x180] sm:$0xff]  ;;  %v249_v5 = vld [vmem:[#allocation2 + $0x3f8] sm:$0xff]  ;;  %v199_v6 = vld [vmem:[#allocation2 + $0x268] sm:$0xff] }
  0x23   :  { %594 = vmatpush.msra.mxu3 %v175_v43  ;;  %575 = vmatpush.msra.mxu2 %v158_v45  ;;  %v216_v7 = vld [vmem:[#allocation2 + $0x2f0] sm:$0xff]  ;;  %v231_v8 = vld [vmem:[#allocation2 + $0x368] sm:$0xff]  ;;  %v198_v10 = vld [vmem:[#allocation2 + $0x260] sm:$0xff] }
  0x24   :  { %555 = vmatpush.msra.mxu1 %v142_v46  ;;  %536 = vmatpush.msra.mxu0 %v125_v48  ;;  %v248_v9 = vld [vmem:[#allocation2 + $0x3f0] sm:$0xff]  ;;  %v215_v11 = vld [vmem:[#allocation2 + $0x2e8] sm:$0xff]  ;;  %v230_v12 = vld [vmem:[#allocation2 + $0x360] sm:$0xff] }
  0x25   :  { %595 = vmatpush.msra.mxu3 %v174_v47  ;;  %576 = vmatpush.msra.mxu2 %v157_v49  ;;  %v247_v13 = vld [vmem:[#allocation2 + $0x3e8] sm:$0xff]  ;;  %v197_v14 = vld [vmem:[#allocation2 + $0x258] sm:$0xff]  ;;  %v214_v15 = vld [vmem:[#allocation2 + $0x2e0] sm:$0xff] }
  0x26   :  { %556 = vmatpush.msra.mxu1 %v141_v50  ;;  %537 = vmatpush.msra.mxu0 %v124_v52  ;;  %v229_v16 = vld [vmem:[#allocation2 + $0x358] sm:$0xff]  ;;  %v246_v17 = vld [vmem:[#allocation2 + $0x3e0] sm:$0xff]  ;;  %v196_v18 = vld [vmem:[#allocation2 + $0x250] sm:$0xff] }
  0x27   :  { %596 = vmatpush.msra.mxu3 %v173_v51  ;;  %577 = vmatpush.msra.mxu2 %v156_v53  ;;  %v213_v19 = vld [vmem:[#allocation2 + $0x2d8] sm:$0xff]  ;;  %v228_v20 = vld [vmem:[#allocation2 + $0x350] sm:$0xff]  ;;  %v195_v22 = vld [vmem:[#allocation2 + $0x248] sm:$0xff] }
  0x28   :  { %557 = vmatpush.msra.mxu1 %v140_v54  ;;  %538 = vmatpush.msra.mxu0 %v123_v56  ;;  %v245_v21 = vld [vmem:[#allocation2 + $0x3d8] sm:$0xff]  ;;  %v212_v23 = vld [vmem:[#allocation2 + $0x2d0] sm:$0xff]  ;;  %v1130_v24 = vld [vmem:[%s1300_s0] sm:$0xff] }
  0x29   :  { %597 = vmatpush.msra.mxu3 %v172_v55  ;;  %578 = vmatpush.msra.mxu2 %v155_v57  ;;  %v227_v25 = vld [vmem:[#allocation2 + $0x348] sm:$0xff]  ;;  %v244_v26 = vld [vmem:[#allocation2 + $0x3d0] sm:$0xff]  ;;  %v194_v27 = vld [vmem:[#allocation2 + $0x240] sm:$0xff]  ;;  %v69_v28 = vmul.f32 %v1130_v24, %v1130_v24 }
  0x2a   :  { %558 = vmatpush.msra.mxu1 %v139_v58  ;;  %539 = vmatpush.msra.mxu0 %v122_v60  ;;  %v211_v29 = vld [vmem:[#allocation2 + $0x2c8] sm:$0xff]  ;;  %v1137_v30 = vld [vmem:[%s1300_s0 + $0x10] sm:$0xff]  ;;  %v226_v32 = vld [vmem:[#allocation2 + $0x340] sm:$0xff] }
  0x2b   :  { %598 = vmatpush.msra.mxu3 %v171_v59  ;;  %579 = vmatpush.msra.mxu2 %v154_v61  ;;  %v1142_v31 = vld [vmem:[%s1300_s0 + $0x8] sm:$0xff]  ;;  %v71_v34 = vmul.f32 %v1137_v30, %v1137_v30  ;;  %v193_v36 = vld [vmem:[#allocation2 + $0x238] sm:$0xff]  ;;  %v210_v37 = vld [vmem:[#allocation2 + $0x2c0] sm:$0xff] }
  0x2c   :  { %604 = vmatpush.msrb.mxu0 %v201_v62  ;;  %559 = vmatpush.msra.mxu1 %v138_v0  ;;  %v243_v33 = vld [vmem:[#allocation2 + $0x3c8] sm:$0xff]  ;;  %v70_v35 = vmul.f32 %v1142_v31, %v1142_v31  ;;  %v1151_v38 = vld [vmem:[%s1300_s0 + $0x18] sm:$0xff]  ;;  %v242_v40 = vld [vmem:[#allocation2 + $0x3c0] sm:$0xff] }
  0x2d   :  { %644 = vmatpush.msrb.mxu2 %v233_v63  ;;  %599 = vmatpush.msra.mxu3 %v170_v1  ;;  %v225_v39 = vld [vmem:[#allocation2 + $0x338] sm:$0xff]  ;;  %v72_v41 = vmul.f32 %v1151_v38, %v1151_v38  ;;  %v192_v43 = vld [vmem:[#allocation2 + $0x230] sm:$0xff]  ;;  %v1158_v45 = vld [vmem:[%s1300_s0 + $0x20] sm:$0xff] }
  0x2e   :  { %605 = vmatpush.msrb.mxu0 %v200_v2  ;;  %624 = vmatpush.msrb.mxu1 %v217_v3  ;;  %v94_v42 = vadd.f32 %v70_v35, %v69_v28  ;;  %v209_v44 = vld [vmem:[#allocation2 + $0x2b8] sm:$0xff]  ;;  %v224_v46 = vld [vmem:[#allocation2 + $0x330] sm:$0xff]  ;;  %v73_v49 = vmul.f32 %v1158_v45, %v1158_v45  ;;  %v191_v50 = vld [vmem:[#allocation2 + $0x228] sm:$0xff] }
  0x2f   :  { %645 = vmatpush.msrb.mxu2 %v232_v4  ;;  %664 = vmatpush.msrb.mxu3 %v249_v5  ;;  %v241_v47 = vld [vmem:[#allocation2 + $0x3b8] sm:$0xff]  ;;  %v208_v51 = vld [vmem:[#allocation2 + $0x2b0] sm:$0xff]  ;;  %v1165_v52 = vld [vmem:[%s1300_s0 + $0x28] sm:$0xff] }
  0x30   :  { %606 = vmatpush.msrb.mxu0 %v199_v6  ;;  %625 = vmatpush.msrb.mxu1 %v216_v7  ;;  %v95_v48 = vadd.f32 %v94_v42, %v71_v34  ;;  %v223_v53 = vld [vmem:[#allocation2 + $0x328] sm:$0xff]  ;;  %v240_v54 = vld [vmem:[#allocation2 + $0x3b0] sm:$0xff]  ;;  %v74_v56 = vmul.f32 %v1165_v52, %v1165_v52  ;;  %v190_v57 = vld [vmem:[#allocation2 + $0x220] sm:$0xff] }
  0x31   :  { %646 = vmatpush.msrb.mxu2 %v231_v8  ;;  %665 = vmatpush.msrb.mxu3 %v248_v9  ;;  %v207_v58 = vld [vmem:[#allocation2 + $0x2a8] sm:$0xff]  ;;  %v1172_v59 = vld [vmem:[%s1300_s0 + $0x30] sm:$0xff]  ;;  %v222_v60 = vld [vmem:[#allocation2 + $0x320] sm:$0xff] }
  0x32   :  { %607 = vmatpush.msrb.mxu0 %v198_v10  ;;  %626 = vmatpush.msrb.mxu1 %v215_v11  ;;  %v96_v55 = vadd.f32 %v95_v48, %v72_v41  ;;  %v239_v61 = vld [vmem:[#allocation2 + $0x3a8] sm:$0xff]  ;;  %v75_v62 = vmul.f32 %v1172_v59, %v1172_v59  ;;  %v189_v0 = vld [vmem:[#allocation2 + $0x218] sm:$0xff]  ;;  %v206_v1 = vld [vmem:[#allocation2 + $0x2a0] sm:$0xff] }
  0x33   :  { %647 = vmatpush.msrb.mxu2 %v230_v12  ;;  %666 = vmatpush.msrb.mxu3 %v247_v13  ;;  %v1179_v2 = vld [vmem:[%s1300_s0 + $0x38] sm:$0xff]  ;;  %v238_v4 = vld [vmem:[#allocation2 + $0x3a0] sm:$0xff]  ;;  %v188_v7 = vld [vmem:[#allocation2 + $0x210] sm:$0xff] }
  0x34   :  { %608 = vmatpush.msrb.mxu0 %v197_v14  ;;  %627 = vmatpush.msrb.mxu1 %v214_v15  ;;  %v97_v63 = vadd.f32 %v96_v55, %v73_v49  ;;  %v221_v3 = vld [vmem:[#allocation2 + $0x318] sm:$0xff]  ;;  %v76_v5 = vmul.f32 %v1179_v2, %v1179_v2  ;;  %v220_v9 = vld [vmem:[#allocation2 + $0x310] sm:$0xff]  ;;  %v187_v12 = vld [vmem:[#allocation2 + $0x208] sm:$0xff] }
  0x35   :  { %648 = vmatpush.msrb.mxu2 %v229_v16  ;;  %667 = vmatpush.msrb.mxu3 %v246_v17  ;;  %v205_v8 = vld [vmem:[#allocation2 + $0x298] sm:$0xff]  ;;  %v204_v13 = vld [vmem:[#allocation2 + $0x290] sm:$0xff]  ;;  %v219_v14 = vld [vmem:[#allocation2 + $0x308] sm:$0xff] }
  0x36   :  { %609 = vmatpush.msrb.mxu0 %v196_v18  ;;  %628 = vmatpush.msrb.mxu1 %v213_v19  ;;  %v98_v6 = vadd.f32 %v97_v63, %v74_v56  ;;  %v237_v10 = vld [vmem:[#allocation2 + $0x398] sm:$0xff]  ;;  %v236_v16 = vld [vmem:[#allocation2 + $0x390] sm:$0xff]  ;;  %v186_v17 = vld [vmem:[#allocation2 + $0x200] sm:$0xff] }
  0x37   :  { %649 = vmatpush.msrb.mxu2 %v228_v20  ;;  %668 = vmatpush.msrb.mxu3 %v245_v21  ;;  %v203_v18 = vld [vmem:[#allocation2 + $0x288] sm:$0xff]  ;;  %v218_v19 = vld [vmem:[#allocation2 + $0x300] sm:$0xff]  ;;  %v265_v21 = vld [vmem:[#allocation2 + $0x478] sm:$0xff] }
  0x38   :  { %610 = vmatpush.msrb.mxu0 %v195_v22  ;;  %629 = vmatpush.msrb.mxu1 %v212_v23  ;;  %v99_v11 = vadd.f32 %v98_v6, %v75_v62  ;;  %v235_v20 = vld [vmem:[#allocation2 + $0x388] sm:$0xff]  ;;  %v297_v22 = vld [vmem:[#allocation2 + $0x578] sm:$0xff]  ;;  %v202_v23 = vld [vmem:[#allocation2 + $0x280] sm:$0xff] }
  0x39   :  { %650 = vmatpush.msrb.mxu2 %v227_v25  ;;  %669 = vmatpush.msrb.mxu3 %v244_v26  ;;  %v234_v25 = vld [vmem:[#allocation2 + $0x380] sm:$0xff]  ;;  %v264_v26 = vld [vmem:[#allocation2 + $0x470] sm:$0xff]  ;;  %v309_v56 = vld [vmem:[#allocation2 + $0x5d8] sm:$0xff] }
  0x3a   :  { %611 = vmatpush.msrb.mxu0 %v194_v27  ;;  %630 = vmatpush.msrb.mxu1 %v211_v29  ;;  %v100_v15 = vadd.f32 %v99_v11, %v76_v5  ;;  %v281_v27 = vld [vmem:[#allocation2 + $0x4f8] sm:$0xff]  ;;  %v296_v28 = vld [vmem:[#allocation2 + $0x570] sm:$0xff]  ;;  %v262_v35 = vld [vmem:[#allocation2 + $0x460] sm:$0xff] }
  0x3b   :  { %651 = vmatpush.msrb.mxu2 %v226_v32  ;;  %670 = vmatpush.msrb.mxu3 %v243_v33  ;;  %v313_v29 = vld [vmem:[#allocation2 + $0x5f8] sm:$0xff]  ;;  %v280_v32 = vld [vmem:[#allocation2 + $0x4f0] sm:$0xff]  ;;  %v295_v33 = vld [vmem:[#allocation2 + $0x568] sm:$0xff] }
  0x3c   :  { %612 = vmatpush.msrb.mxu0 %v193_v36  ;;  %631 = vmatpush.msrb.mxu1 %v210_v37  ;;  %v312_v34 = vld [vmem:[#allocation2 + $0x5f0] sm:$0xff]  ;;  %v275_v62 = vld [vmem:[#allocation2 + $0x4c8] sm:$0xff]  ;;  %v290_v63 = vld [vmem:[#allocation2 + $0x540] sm:$0xff] }
  0x3d   :  { %652 = vmatpush.msrb.mxu2 %v225_v39  ;;  %671 = vmatpush.msrb.mxu3 %v242_v40  ;;  %v1198_v37 = vld [vmem:[%s1300_s0 + $0x50] sm:$0xff]  ;;  %v279_v39 = vld [vmem:[#allocation2 + $0x4e8] sm:$0xff]  ;;  %v294_v40 = vld [vmem:[#allocation2 + $0x560] sm:$0xff] }
  0x3e   :  { %613 = vmatpush.msrb.mxu0 %v192_v43  ;;  %632 = vmatpush.msrb.mxu1 %v209_v44  ;;  %v79_v41 = vmul.f32 %v1198_v37, %v1198_v37  ;;  %v311_v43 = vld [vmem:[#allocation2 + $0x5e8] sm:$0xff]  ;;  %v1213_v44 = vld [vmem:[%s1300_s0 + $0x58] sm:$0xff]  ;;  %v292_v55 = vld [vmem:[#allocation2 + $0x550] sm:$0xff] }
  0x3f   :  { %653 = vmatpush.msrb.mxu2 %v224_v46  ;;  %672 = vmatpush.msrb.mxu3 %v241_v47  ;;  %v261_v46 = vld [vmem:[#allocation2 + $0x458] sm:$0xff]  ;;  %v278_v47 = vld [vmem:[#allocation2 + $0x4e0] sm:$0xff]  ;;  %v80_v49 = vmul.f32 %v1213_v44, %v1213_v44  ;;  %v256_v5 = vld [vmem:[#allocation2 + $0x430] sm:$0xff] }
  0x40   :  { %614 = vmatpush.msrb.mxu0 %v191_v50  ;;  %633 = vmatpush.msrb.mxu1 %v208_v51  ;;  %v293_v50 = vld [vmem:[#allocation2 + $0x558] sm:$0xff]  ;;  %v310_v51 = vld [vmem:[#allocation2 + $0x5e0] sm:$0xff]  ;;  %v287_v11 = vld [vmem:[#allocation2 + $0x528] sm:$0xff] }
  0x41   :  { %654 = vmatpush.msrb.mxu2 %v223_v53  ;;  %673 = vmatpush.msrb.mxu3 %v240_v54  ;;  %v277_v53 = vld [vmem:[#allocation2 + $0x4d8] sm:$0xff] }
  0x42   :  { %615 = vmatpush.msrb.mxu0 %v190_v57  ;;  %634 = vmatpush.msrb.mxu1 %v207_v58  ;;  %v259_v57 = vld [vmem:[#allocation2 + $0x448] sm:$0xff]  ;;  %v276_v58 = vld [vmem:[#allocation2 + $0x4d0] sm:$0xff]  ;;  %v273_v6 = vld [vmem:[#allocation2 + $0x4b8] sm:$0xff] }
  0x43   :  { %655 = vmatpush.msrb.mxu2 %v222_v60  ;;  %674 = vmatpush.msrb.mxu3 %v239_v61  ;;  %v291_v60 = vld [vmem:[#allocation2 + $0x548] sm:$0xff]  ;;  %v308_v61 = vld [vmem:[#allocation2 + $0x5d0] sm:$0xff] }
  0x44   :  { %616 = vmatpush.msrb.mxu0 %v189_v0  ;;  %635 = vmatpush.msrb.mxu1 %v206_v1  ;;  %v307_v0 = vld [vmem:[#allocation2 + $0x5c8] sm:$0xff]  ;;  %v257_v1 = vld [vmem:[#allocation2 + $0x438] sm:$0xff] }
  0x45   :  { %656 = vmatpush.msrb.mxu2 %v221_v3  ;;  %675 = vmatpush.msrb.mxu3 %v238_v4  ;;  %v289_v3 = vld [vmem:[#allocation2 + $0x538] sm:$0xff]  ;;  %v306_v4 = vld [vmem:[#allocation2 + $0x5c0] sm:$0xff] }
  0x46   :  { %617 = vmatpush.msrb.mxu0 %v188_v7  ;;  %636 = vmatpush.msrb.mxu1 %v205_v8  ;;  %v288_v7 = vld [vmem:[#allocation2 + $0x530] sm:$0xff]  ;;  %v305_v8 = vld [vmem:[#allocation2 + $0x5b8] sm:$0xff] }
  0x47   :  { %657 = vmatpush.msrb.mxu2 %v220_v9  ;;  %676 = vmatpush.msrb.mxu3 %v237_v10  ;;  %v255_v9 = vld [vmem:[#allocation2 + $0x428] sm:$0xff]  ;;  %v272_v10 = vld [vmem:[#allocation2 + $0x4b0] sm:$0xff] }
  0x48   :  { %580 = vmatmul.f32.vlgmr.msra.gmra.mxu2 %v1137_v30  ;;  %618 = vmatpush.msrb.mxu0 %v187_v12  ;;  %v1190_v30 = vld [vmem:[%s1300_s0 + $0x40] sm:$0xff]  ;;  %v304_v12 = vld [vmem:[#allocation2 + $0x5b0] sm:$0xff] }
  0x49   :  { %637 = vmatpush.msrb.mxu1 %v204_v13  ;;  %658 = vmatpush.msrb.mxu2 %v219_v14  ;;  %v254_v13 = vld [vmem:[#allocation2 + $0x420] sm:$0xff]  ;;  %v271_v14 = vld [vmem:[#allocation2 + $0x4a8] sm:$0xff] }
  0x4a   :  { %677 = vmatpush.msrb.mxu3 %v236_v16  ;;  %540 = vmatmul.f32.vlgmr.msra.gmra.mxu0 %v1130_v24  ;;  %v263_v24 = vld [vmem:[#allocation2 + $0x468] sm:$0xff] }
  0x4b   :  { %600 = vmatmul.f32.vlgmr.msra.gmra.mxu3 %v1151_v38  ;;  %619 = vmatpush.msrb.mxu0 %v186_v17  ;;  %v1203_v38 = vld [vmem:[%s1300_s0 + $0x48] sm:$0xff]  ;;  %v253_v17 = vld [vmem:[#allocation2 + $0x418] sm:$0xff] }
  0x4c   :  { %638 = vmatpush.msrb.mxu1 %v203_v18  ;;  %659 = vmatpush.msrb.mxu2 %v218_v19  ;;  %v78_v42 = vmul.f32 %v1203_v38, %v1203_v38  ;;  %v303_v16 = vld [vmem:[#allocation2 + $0x5a8] sm:$0xff]  ;;  %v270_v18 = vld [vmem:[#allocation2 + $0x4a0] sm:$0xff]  ;;  %v285_v19 = vld [vmem:[#allocation2 + $0x518] sm:$0xff] }
  0x4d   :  { %678 = vmatpush.msrb.mxu3 %v235_v20  ;;  %560 = vmatmul.f32.vlgmr.msra.gmra.mxu1 %v1142_v31  ;;  %v77_v31 = vmul.f32 %v1190_v30, %v1190_v30  ;;  %v302_v20 = vld [vmem:[#allocation2 + $0x5a0] sm:$0xff] }
  0x4e   :  { %684 = vmatpush.msra.mxu0 %v265_v21  ;;  %724 = vmatpush.msra.mxu2 %v297_v22  ;;  %v252_v21 = vld [vmem:[#allocation2 + $0x410] sm:$0xff]  ;;  %v269_v22 = vld [vmem:[#allocation2 + $0x498] sm:$0xff] }
  0x4f   :  { %639 = vmatpush.msrb.mxu1 %v202_v23  ;;  %679 = vmatpush.msrb.mxu3 %v234_v25  ;;  %v101_v36 = vadd.f32 %v100_v15, %v77_v31  ;;  %v286_v15 = vld [vmem:[#allocation2 + $0x520] sm:$0xff]  ;;  %v284_v23 = vld [vmem:[#allocation2 + $0x510] sm:$0xff]  ;;  %v301_v25 = vld [vmem:[#allocation2 + $0x598] sm:$0xff] }
  0x50   :  { %685 = vmatpush.msra.mxu0 %v264_v26  ;;  %725 = vmatpush.msra.mxu2 %v296_v28  ;;  %v251_v26 = vld [vmem:[#allocation2 + $0x408] sm:$0xff] }
  0x51   :  { %704 = vmatpush.msra.mxu1 %v281_v27  ;;  %744 = vmatpush.msra.mxu3 %v313_v29  ;;  %v102_v48 = vadd.f32 %v101_v36, %v78_v42  ;;  %v268_v27 = vld [vmem:[#allocation2 + $0x490] sm:$0xff]  ;;  %v283_v28 = vld [vmem:[#allocation2 + $0x508] sm:$0xff]  ;;  %v266_v36 = vld [vmem:[#allocation2 + $0x480] sm:$0xff] }
  0x52   :  { %660 = vmatmul.f32.vlgmr.msrb.gmra.mxu2 %v1172_v59  ;;  %686 = vmatpush.msra.mxu0 %v263_v24  ;;  %v300_v29 = vld [vmem:[#allocation2 + $0x590] sm:$0xff]  ;;  %v250_v24 = vld [vmem:[#allocation2 + $0x400] sm:$0xff]  ;;  %v299_v31 = vld [vmem:[#allocation2 + $0x588] sm:$0xff] }
  0x53   :  { %705 = vmatpush.msra.mxu1 %v280_v32  ;;  %726 = vmatpush.msra.mxu2 %v295_v33  ;;  %v103_v54 = vadd.f32 %v102_v48, %v79_v41  ;;  %v267_v32 = vld [vmem:[#allocation2 + $0x488] sm:$0xff]  ;;  %v282_v33 = vld [vmem:[#allocation2 + $0x500] sm:$0xff]  ;;  %v345_v41 = vld [vmem:[#allocation2 + $0x6f8] sm:$0xff] }
  0x54   :  { %745 = vmatpush.msra.mxu3 %v312_v34  ;;  %620 = vmatmul.f32.vlgmr.msrb.gmra.mxu0 %v1158_v45  ;;  %v260_v45 = vld [vmem:[#allocation2 + $0x450] sm:$0xff]  ;;  %v329_v34 = vld [vmem:[#allocation2 + $0x678] sm:$0xff]  ;;  %v359_v48 = vld [vmem:[#allocation2 + $0x768] sm:$0xff] }
  0x55   :  { %680 = vmatmul.f32.vlgmr.msrb.gmra.mxu3 %v1179_v2  ;;  %687 = vmatpush.msra.mxu0 %v262_v35  ;;  %v1219_v59 = vadd.f32 %v103_v54, %v80_v49  ;;  %v274_v2 = vld [vmem:[#allocation2 + $0x4c0] sm:$0xff]  ;;  %v361_v35 = vld [vmem:[#allocation2 + $0x778] sm:$0xff]  ;;  %v360_v42 = vld [vmem:[#allocation2 + $0x770] sm:$0xff] }
  0x56   :  { %706 = vmatpush.msra.mxu1 %v279_v39  ;;  %727 = vmatpush.msra.mxu2 %v294_v40  ;;  %v298_v39 = vld [vmem:[#allocation2 + $0x580] sm:$0xff]  ;;  %v328_v40 = vld [vmem:[#allocation2 + $0x670] sm:$0xff]  ;;  %v343_v49 = vld [vmem:[#allocation2 + $0x6e8] sm:$0xff] }
  0x57   :  { %746 = vmatpush.msra.mxu3 %v311_v43  ;;  %640 = vmatmul.f32.vlgmr.msrb.gmra.mxu1 %v1165_v52  ;;  %v258_v52 = vld [vmem:[#allocation2 + $0x440] sm:$0xff]  ;;  %v377_v43 = vld [vmem:[#allocation2 + $0x7f8] sm:$0xff]  ;;  %v324_v54 = vld [vmem:[#allocation2 + $0x650] sm:$0xff] }
  0x58   :  { %688 = vmatpush.msra.mxu0 %v261_v46  ;;  %707 = vmatpush.msra.mxu1 %v278_v47  ;;  %v327_v46 = vld [vmem:[#allocation2 + $0x668] sm:$0xff]  ;;  %v344_v47 = vld [vmem:[#allocation2 + $0x6f0] sm:$0xff] }
  0x59   :  { %728 = vmatpush.msra.mxu2 %v293_v50  ;;  %747 = vmatpush.msra.mxu3 %v310_v51  ;;  %v358_v50 = vld [vmem:[#allocation2 + $0x760] sm:$0xff]  ;;  %v375_v51 = vld [vmem:[#allocation2 + $0x7e8] sm:$0xff] }
  0x5a   :  { %689 = vmatpush.msra.mxu0 %v260_v45  ;;  %708 = vmatpush.msra.mxu1 %v277_v53  ;;  %v325_v45 = vld [vmem:[#allocation2 + $0x658] sm:$0xff]  ;;  %v374_v53 = vld [vmem:[#allocation2 + $0x7e0] sm:$0xff] }
  0x5b   :  { %729 = vmatpush.msra.mxu2 %v292_v55  ;;  %748 = vmatpush.msra.mxu3 %v309_v56  ;;  %v341_v55 = vld [vmem:[#allocation2 + $0x6d8] sm:$0xff]  ;;  %v356_v56 = vld [vmem:[#allocation2 + $0x750] sm:$0xff] }
  0x5c   :  { %690 = vmatpush.msra.mxu0 %v259_v57  ;;  %709 = vmatpush.msra.mxu1 %v276_v58  ;;  %v373_v57 = vld [vmem:[#allocation2 + $0x7d8] sm:$0xff]  ;;  %v323_v58 = vld [vmem:[#allocation2 + $0x648] sm:$0xff] }
  0x5d   :  { %730 = vmatpush.msra.mxu2 %v291_v60  ;;  %749 = vmatpush.msra.mxu3 %v308_v61  ;;  %v340_v60 = vld [vmem:[#allocation2 + $0x6d0] sm:$0xff]  ;;  %v355_v61 = vld [vmem:[#allocation2 + $0x748] sm:$0xff] }
  0x5e   :  { %691 = vmatpush.msra.mxu0 %v258_v52  ;;  %710 = vmatpush.msra.mxu1 %v275_v62  ;;  %v372_v52 = vld [vmem:[#allocation2 + $0x7d0] sm:$0xff]  ;;  %v322_v62 = vld [vmem:[#allocation2 + $0x640] sm:$0xff] }
  0x5f   :  { %731 = vmatpush.msra.mxu2 %v290_v63  ;;  %750 = vmatpush.msra.mxu3 %v307_v0  ;;  %v339_v63 = vld [vmem:[#allocation2 + $0x6c8] sm:$0xff]  ;;  %v354_v0 = vld [vmem:[#allocation2 + $0x740] sm:$0xff] }
  0x60   :  { %692 = vmatpush.msra.mxu0 %v257_v1  ;;  %711 = vmatpush.msra.mxu1 %v274_v2  ;;  %v371_v1 = vld [vmem:[#allocation2 + $0x7c8] sm:$0xff]  ;;  %v321_v2 = vld [vmem:[#allocation2 + $0x638] sm:$0xff] }
  0x61   :  { %732 = vmatpush.msra.mxu2 %v289_v3  ;;  %751 = vmatpush.msra.mxu3 %v306_v4  ;;  %v338_v3 = vld [vmem:[#allocation2 + $0x6c0] sm:$0xff]  ;;  %v353_v4 = vld [vmem:[#allocation2 + $0x738] sm:$0xff] }
  0x62   :  { %693 = vmatpush.msra.mxu0 %v256_v5  ;;  %712 = vmatpush.msra.mxu1 %v273_v6  ;;  %v370_v5 = vld [vmem:[#allocation2 + $0x7c0] sm:$0xff]  ;;  %v320_v6 = vld [vmem:[#allocation2 + $0x630] sm:$0xff] }
  0x63   :  { %733 = vmatpush.msra.mxu2 %v288_v7  ;;  %752 = vmatpush.msra.mxu3 %v305_v8  ;;  %v337_v7 = vld [vmem:[#allocation2 + $0x6b8] sm:$0xff]  ;;  %v352_v8 = vld [vmem:[#allocation2 + $0x730] sm:$0xff] }
  0x64   :  { %694 = vmatpush.msra.mxu0 %v255_v9  ;;  %713 = vmatpush.msra.mxu1 %v272_v10  ;;  %v369_v9 = vld [vmem:[#allocation2 + $0x7b8] sm:$0xff]  ;;  %v319_v10 = vld [vmem:[#allocation2 + $0x628] sm:$0xff] }
  0x65   :  { %734 = vmatpush.msra.mxu2 %v287_v11  ;;  %753 = vmatpush.msra.mxu3 %v304_v12  ;;  %v336_v11 = vld [vmem:[#allocation2 + $0x6b0] sm:$0xff]  ;;  %v351_v12 = vld [vmem:[#allocation2 + $0x728] sm:$0xff] }
  0x66   :  { %695 = vmatpush.msra.mxu0 %v254_v13  ;;  %714 = vmatpush.msra.mxu1 %v271_v14  ;;  %v368_v13 = vld [vmem:[#allocation2 + $0x7b0] sm:$0xff]  ;;  %v318_v14 = vld [vmem:[#allocation2 + $0x620] sm:$0xff] }
  0x67   :  { %735 = vmatpush.msra.mxu2 %v286_v15  ;;  %754 = vmatpush.msra.mxu3 %v303_v16  ;;  %v335_v15 = vld [vmem:[#allocation2 + $0x6a8] sm:$0xff]  ;;  %v350_v16 = vld [vmem:[#allocation2 + $0x720] sm:$0xff] }
  0x68   :  { %696 = vmatpush.msra.mxu0 %v253_v17  ;;  %715 = vmatpush.msra.mxu1 %v270_v18  ;;  %v367_v17 = vld [vmem:[#allocation2 + $0x7a8] sm:$0xff]  ;;  %v317_v18 = vld [vmem:[#allocation2 + $0x618] sm:$0xff] }
  0x69   :  { %736 = vmatpush.msra.mxu2 %v285_v19  ;;  %755 = vmatpush.msra.mxu3 %v302_v20  ;;  %v334_v19 = vld [vmem:[#allocation2 + $0x6a0] sm:$0xff]  ;;  %v349_v20 = vld [vmem:[#allocation2 + $0x718] sm:$0xff] }
  0x6a   :  { %697 = vmatpush.msra.mxu0 %v252_v21  ;;  %716 = vmatpush.msra.mxu1 %v269_v22  ;;  %v366_v21 = vld [vmem:[#allocation2 + $0x7a0] sm:$0xff]  ;;  %v316_v22 = vld [vmem:[#allocation2 + $0x610] sm:$0xff] }
  0x6b   :  { %737 = vmatpush.msra.mxu2 %v284_v23  ;;  %756 = vmatpush.msra.mxu3 %v301_v25  ;;  %v333_v23 = vld [vmem:[#allocation2 + $0x698] sm:$0xff]  ;;  %v348_v25 = vld [vmem:[#allocation2 + $0x710] sm:$0xff] }
  0x6c   :  { %698 = vmatpush.msra.mxu0 %v251_v26  ;;  %717 = vmatpush.msra.mxu1 %v268_v27  ;;  %v365_v26 = vld [vmem:[#allocation2 + $0x798] sm:$0xff]  ;;  %v315_v27 = vld [vmem:[#allocation2 + $0x608] sm:$0xff] }
  0x6d   :  { %738 = vmatpush.msra.mxu2 %v283_v28  ;;  %757 = vmatpush.msra.mxu3 %v300_v29  ;;  %v332_v28 = vld [vmem:[#allocation2 + $0x690] sm:$0xff]  ;;  %v347_v29 = vld [vmem:[#allocation2 + $0x708] sm:$0xff] }
  0x6e   :  { %699 = vmatpush.msra.mxu0 %v250_v24  ;;  %718 = vmatpush.msra.mxu1 %v267_v32  ;;  %v364_v24 = vld [vmem:[#allocation2 + $0x790] sm:$0xff]  ;;  %v314_v32 = vld [vmem:[#allocation2 + $0x600] sm:$0xff] }
  0x6f   :  { %739 = vmatpush.msra.mxu2 %v282_v33  ;;  %758 = vmatpush.msra.mxu3 %v299_v31  ;;  %v331_v33 = vld [vmem:[#allocation2 + $0x688] sm:$0xff]  ;;  %v346_v31 = vld [vmem:[#allocation2 + $0x700] sm:$0xff] }
  0x70   :  { %700 = vmatmul.f32.vlgmr.msra.gmra.mxu0 %v1190_v30  ;;  %740 = vmatmul.f32.vlgmr.msra.gmra.mxu2 %v1198_v37  ;;  %v376_v30 = vld [vmem:[#allocation2 + $0x7f0] sm:$0xff]  ;;  %v326_v37 = vld [vmem:[#allocation2 + $0x660] sm:$0xff] }
  0x71   :  { %764 = vmatpush.msrb.mxu0 %v329_v34  ;;  %804 = vmatpush.msrb.mxu2 %v361_v35  ;;  %v363_v34 = vld [vmem:[#allocation2 + $0x788] sm:$0xff]  ;;  %v1228_v35 = vld [vmem:[%s1300_s0 + $0x60] sm:$0xff] }
  0x72   :  { %719 = vmatpush.msra.mxu1 %v266_v36  ;;  %759 = vmatpush.msra.mxu3 %v298_v39  ;;  %v1233_v36 = vld [vmem:[%s1300_s0 + $0x70] sm:$0xff]  ;;  %v393_v39 = vld [vmem:[#allocation2 + $0x878] sm:$0xff] }
  0x73   :  { %720 = vmatmul.f32.vlgmr.msra.gmra.mxu1 %v1203_v38  ;;  %760 = vmatmul.f32.vlgmr.msra.gmra.mxu3 %v1213_v44  ;;  %v342_v38 = vld [vmem:[#allocation2 + $0x6e0] sm:$0xff]  ;;  %v357_v44 = vld [vmem:[#allocation2 + $0x758] sm:$0xff] }
  0x74   :  { %765 = vmatpush.msrb.mxu0 %v328_v40  ;;  %784 = vmatpush.msrb.mxu1 %v345_v41  ;;  %v425_v40 = vld [vmem:[#allocation2 + $0x978] sm:$0xff]  ;;  %v330_v41 = vld [vmem:[#allocation2 + $0x680] sm:$0xff] }
  0x75   :  { %805 = vmatpush.msrb.mxu2 %v360_v42  ;;  %824 = vmatpush.msrb.mxu3 %v377_v43  ;;  %v362_v42 = vld [vmem:[#allocation2 + $0x780] sm:$0xff]  ;;  %v1240_v43 = vld [vmem:[%s1300_s0 + $0x68] sm:$0xff] }
  0x76   :  { %766 = vmatpush.msrb.mxu0 %v327_v46  ;;  %785 = vmatpush.msrb.mxu1 %v344_v47  ;;  %v1245_v46 = vld [vmem:[%s1300_s0 + $0x78] sm:$0xff]  ;;  %v392_v47 = vld [vmem:[#allocation2 + $0x870] sm:$0xff] }
  0x77   :  { %806 = vmatpush.msrb.mxu2 %v359_v48  ;;  %825 = vmatpush.msrb.mxu3 %v376_v30  ;;  %v409_v48 = vld [vmem:[#allocation2 + $0x8f8] sm:$0xff]  ;;  %v424_v30 = vld [vmem:[#allocation2 + $0x970] sm:$0xff] }
  0x78   :  { %767 = vmatpush.msrb.mxu0 %v326_v37  ;;  %786 = vmatpush.msrb.mxu1 %v343_v49  ;;  %v441_v37 = vld [vmem:[#allocation2 + $0x9f8] sm:$0xff]  ;;  %v391_v49 = vld [vmem:[#allocation2 + $0x868] sm:$0xff] }
  0x79   :  { %807 = vmatpush.msrb.mxu2 %v358_v50  ;;  %826 = vmatpush.msrb.mxu3 %v375_v51  ;;  %v408_v50 = vld [vmem:[#allocation2 + $0x8f0] sm:$0xff]  ;;  %v423_v51 = vld [vmem:[#allocation2 + $0x968] sm:$0xff] }
  0x7a   :  { %768 = vmatpush.msrb.mxu0 %v325_v45  ;;  %787 = vmatpush.msrb.mxu1 %v342_v38  ;;  %v440_v45 = vld [vmem:[#allocation2 + $0x9f0] sm:$0xff]  ;;  %v390_v38 = vld [vmem:[#allocation2 + $0x860] sm:$0xff] }
  0x7b   :  { %808 = vmatpush.msrb.mxu2 %v357_v44  ;;  %827 = vmatpush.msrb.mxu3 %v374_v53  ;;  %v407_v44 = vld [vmem:[#allocation2 + $0x8e8] sm:$0xff]  ;;  %v422_v53 = vld [vmem:[#allocation2 + $0x960] sm:$0xff] }
  0x7c   :  { %769 = vmatpush.msrb.mxu0 %v324_v54  ;;  %788 = vmatpush.msrb.mxu1 %v341_v55  ;;  %v439_v54 = vld [vmem:[#allocation2 + $0x9e8] sm:$0xff]  ;;  %v389_v55 = vld [vmem:[#allocation2 + $0x858] sm:$0xff] }
  0x7d   :  { %809 = vmatpush.msrb.mxu2 %v356_v56  ;;  %828 = vmatpush.msrb.mxu3 %v373_v57  ;;  %v406_v56 = vld [vmem:[#allocation2 + $0x8e0] sm:$0xff]  ;;  %v421_v57 = vld [vmem:[#allocation2 + $0x958] sm:$0xff] }
  0x7e   :  { %770 = vmatpush.msrb.mxu0 %v323_v58  ;;  %789 = vmatpush.msrb.mxu1 %v340_v60  ;;  %v438_v58 = vld [vmem:[#allocation2 + $0x9e0] sm:$0xff]  ;;  %v388_v60 = vld [vmem:[#allocation2 + $0x850] sm:$0xff] }
  0x7f   :  { %810 = vmatpush.msrb.mxu2 %v355_v61  ;;  %829 = vmatpush.msrb.mxu3 %v372_v52  ;;  %v405_v61 = vld [vmem:[#allocation2 + $0x8d8] sm:$0xff]  ;;  %v420_v52 = vld [vmem:[#allocation2 + $0x950] sm:$0xff] }
  0x80   :  { %771 = vmatpush.msrb.mxu0 %v322_v62  ;;  %790 = vmatpush.msrb.mxu1 %v339_v63  ;;  %v437_v62 = vld [vmem:[#allocation2 + $0x9d8] sm:$0xff]  ;;  %v387_v63 = vld [vmem:[#allocation2 + $0x848] sm:$0xff] }
  0x81   :  { %811 = vmatpush.msrb.mxu2 %v354_v0  ;;  %830 = vmatpush.msrb.mxu3 %v371_v1  ;;  %v404_v0 = vld [vmem:[#allocation2 + $0x8d0] sm:$0xff]  ;;  %v419_v1 = vld [vmem:[#allocation2 + $0x948] sm:$0xff] }
  0x82   :  { %772 = vmatpush.msrb.mxu0 %v321_v2  ;;  %791 = vmatpush.msrb.mxu1 %v338_v3  ;;  %v436_v2 = vld [vmem:[#allocation2 + $0x9d0] sm:$0xff]  ;;  %v386_v3 = vld [vmem:[#allocation2 + $0x840] sm:$0xff] }
  0x83   :  { %812 = vmatpush.msrb.mxu2 %v353_v4  ;;  %831 = vmatpush.msrb.mxu3 %v370_v5  ;;  %v403_v4 = vld [vmem:[#allocation2 + $0x8c8] sm:$0xff]  ;;  %v418_v5 = vld [vmem:[#allocation2 + $0x940] sm:$0xff] }
  0x84   :  { %773 = vmatpush.msrb.mxu0 %v320_v6  ;;  %792 = vmatpush.msrb.mxu1 %v337_v7  ;;  %v435_v6 = vld [vmem:[#allocation2 + $0x9c8] sm:$0xff]  ;;  %v385_v7 = vld [vmem:[#allocation2 + $0x838] sm:$0xff] }
  0x85   :  { %813 = vmatpush.msrb.mxu2 %v352_v8  ;;  %832 = vmatpush.msrb.mxu3 %v369_v9  ;;  %v402_v8 = vld [vmem:[#allocation2 + $0x8c0] sm:$0xff]  ;;  %v417_v9 = vld [vmem:[#allocation2 + $0x938] sm:$0xff] }
  0x86   :  { %774 = vmatpush.msrb.mxu0 %v319_v10  ;;  %793 = vmatpush.msrb.mxu1 %v336_v11  ;;  %v434_v10 = vld [vmem:[#allocation2 + $0x9c0] sm:$0xff]  ;;  %v384_v11 = vld [vmem:[#allocation2 + $0x830] sm:$0xff] }
  0x87   :  { %814 = vmatpush.msrb.mxu2 %v351_v12  ;;  %833 = vmatpush.msrb.mxu3 %v368_v13  ;;  %v401_v12 = vld [vmem:[#allocation2 + $0x8b8] sm:$0xff]  ;;  %v81_v13 = vmul.f32 %v1228_v35, %v1228_v35 }
  0x88   :  { %775 = vmatpush.msrb.mxu0 %v318_v14  ;;  %794 = vmatpush.msrb.mxu1 %v335_v15  ;;  %v416_v14 = vld [vmem:[#allocation2 + $0x930] sm:$0xff]  ;;  %v433_v15 = vld [vmem:[#allocation2 + $0x9b8] sm:$0xff] }
  0x89   :  { %815 = vmatpush.msrb.mxu2 %v350_v16  ;;  %834 = vmatpush.msrb.mxu3 %v367_v17  ;;  %v383_v16 = vld [vmem:[#allocation2 + $0x828] sm:$0xff]  ;;  %v400_v17 = vld [vmem:[#allocation2 + $0x8b0] sm:$0xff] }
  0x8a   :  { %776 = vmatpush.msrb.mxu0 %v317_v18  ;;  %795 = vmatpush.msrb.mxu1 %v334_v19  ;;  %v415_v18 = vld [vmem:[#allocation2 + $0x928] sm:$0xff]  ;;  %v432_v19 = vld [vmem:[#allocation2 + $0x9b0] sm:$0xff] }
  0x8b   :  { %816 = vmatpush.msrb.mxu2 %v349_v20  ;;  %835 = vmatpush.msrb.mxu3 %v366_v21  ;;  %v382_v20 = vld [vmem:[#allocation2 + $0x820] sm:$0xff]  ;;  %v399_v21 = vld [vmem:[#allocation2 + $0x8a8] sm:$0xff] }
  0x8c   :  { %777 = vmatpush.msrb.mxu0 %v316_v22  ;;  %796 = vmatpush.msrb.mxu1 %v333_v23  ;;  %v105_v22 = vadd.f32 %v1219_v59, %v81_v13  ;;  %v82_v23 = vmul.f32 %v1240_v43, %v1240_v43  ;;  %v83_v59 = vmul.f32 %v1233_v36, %v1233_v36  ;;  %v469_v13 = vld [vmem:[#allocation2 + $0xad8] sm:$0xff] }
  0x8d   :  { %817 = vmatpush.msrb.mxu2 %v348_v25  ;;  %836 = vmatpush.msrb.mxu3 %v365_v26  ;;  %v414_v25 = vld [vmem:[#allocation2 + $0x920] sm:$0xff]  ;;  %v431_v26 = vld [vmem:[#allocation2 + $0x9a8] sm:$0xff] }
  0x8e   :  { %778 = vmatpush.msrb.mxu0 %v315_v27  ;;  %797 = vmatpush.msrb.mxu1 %v332_v28  ;;  %v381_v27 = vld [vmem:[#allocation2 + $0x818] sm:$0xff]  ;;  %v398_v28 = vld [vmem:[#allocation2 + $0x8a0] sm:$0xff] }
  0x8f   :  { %818 = vmatpush.msrb.mxu2 %v347_v29  ;;  %837 = vmatpush.msrb.mxu3 %v364_v24  ;;  %v413_v29 = vld [vmem:[#allocation2 + $0x918] sm:$0xff]  ;;  %v430_v24 = vld [vmem:[#allocation2 + $0x9a0] sm:$0xff] }
  0x90   :  { %779 = vmatpush.msrb.mxu0 %v314_v32  ;;  %798 = vmatpush.msrb.mxu1 %v331_v33  ;;  %v380_v32 = vld [vmem:[#allocation2 + $0x810] sm:$0xff]  ;;  %v397_v33 = vld [vmem:[#allocation2 + $0x898] sm:$0xff] }
  0x91   :  { %819 = vmatpush.msrb.mxu2 %v346_v31  ;;  %838 = vmatpush.msrb.mxu3 %v363_v34  ;;  %v106_v31 = vadd.f32 %v105_v22, %v82_v23  ;;  %v412_v34 = vld [vmem:[#allocation2 + $0x910] sm:$0xff]  ;;  %v450_v22 = vld [vmem:[#allocation2 + $0xa40] sm:$0xff]  ;;  %v467_v23 = vld [vmem:[#allocation2 + $0xac8] sm:$0xff] }
  0x92   :  { %780 = vmatmul.f32.vlgmr.msrb.gmra.mxu0 %v1228_v35  ;;  %820 = vmatmul.f32.vlgmr.msrb.gmra.mxu2 %v1233_v36  ;;  %v429_v35 = vld [vmem:[#allocation2 + $0x998] sm:$0xff]  ;;  %v84_v36 = vmul.f32 %v1245_v46, %v1245_v46 }
  0x93   :  { %844 = vmatpush.msra.mxu0 %v393_v39  ;;  %884 = vmatpush.msra.mxu2 %v425_v40  ;;  %v379_v39 = vld [vmem:[#allocation2 + $0x808] sm:$0xff]  ;;  %v396_v40 = vld [vmem:[#allocation2 + $0x890] sm:$0xff] }
  0x94   :  { %799 = vmatpush.msrb.mxu1 %v330_v41  ;;  %839 = vmatpush.msrb.mxu3 %v362_v42  ;;  %v411_v41 = vld [vmem:[#allocation2 + $0x908] sm:$0xff]  ;;  %v428_v42 = vld [vmem:[#allocation2 + $0x990] sm:$0xff] }
  0x95   :  { %800 = vmatmul.f32.vlgmr.msrb.gmra.mxu1 %v1240_v43  ;;  %840 = vmatmul.f32.vlgmr.msrb.gmra.mxu3 %v1245_v46  ;;  %v378_v43 = vld [vmem:[#allocation2 + $0x800] sm:$0xff] }
  0x96   :  { %845 = vmatpush.msra.mxu0 %v392_v47  ;;  %864 = vmatpush.msra.mxu1 %v409_v48  ;;  %v395_v47 = vld [vmem:[#allocation2 + $0x888] sm:$0xff]  ;;  %v107_v48 = vadd.f32 %v106_v31, %v83_v59  ;;  %v394_v46 = vld [vmem:[#allocation2 + $0x880] sm:$0xff]  ;;  %v448_v31 = vld [vmem:[#allocation2 + $0xa30] sm:$0xff] }
  0x97   :  { %885 = vmatpush.msra.mxu2 %v424_v30  ;;  %904 = vmatpush.msra.mxu3 %v441_v37  ;;  %v410_v30 = vld [vmem:[#allocation2 + $0x900] sm:$0xff]  ;;  %v427_v37 = vld [vmem:[#allocation2 + $0x988] sm:$0xff] }
  0x98   :  { %846 = vmatpush.msra.mxu0 %v391_v49  ;;  %865 = vmatpush.msra.mxu1 %v408_v50  ;;  %v60_v49 = vld [vmem:[%s1300_s0 + $0x80] sm:$0xff]  ;;  %v62_v50 = vld [vmem:[%s1300_s0 + $0x90] sm:$0xff] }
  0x99   :  { %886 = vmatpush.msra.mxu2 %v423_v51  ;;  %905 = vmatpush.msra.mxu3 %v440_v45  ;;  %v457_v51 = vld [vmem:[#allocation2 + $0xa78] sm:$0xff] }
  0x9a   :  { %847 = vmatpush.msra.mxu0 %v390_v38  ;;  %866 = vmatpush.msra.mxu1 %v407_v44  ;;  %v489_v45 = vld [vmem:[#allocation2 + $0xb78] sm:$0xff]  ;;  %v426_v38 = vld [vmem:[#allocation2 + $0x980] sm:$0xff]  ;;  %v108_v44 = vadd.f32 %v107_v48, %v84_v36 }
  0x9b   :  { %887 = vmatpush.msra.mxu2 %v422_v53  ;;  %906 = vmatpush.msra.mxu3 %v439_v54  ;;  %v85_v53 = vmul.f32 %v60_v49, %v60_v49  ;;  %v61_v54 = vld [vmem:[%s1300_s0 + $0x88] sm:$0xff] }
  0x9c   :  { %848 = vmatpush.msra.mxu0 %v389_v55  ;;  %867 = vmatpush.msra.mxu1 %v406_v56  ;;  %v63_v55 = vld [vmem:[%s1300_s0 + $0x98] sm:$0xff]  ;;  %v456_v56 = vld [vmem:[#allocation2 + $0xa70] sm:$0xff] }
  0x9d   :  { %888 = vmatpush.msra.mxu2 %v421_v57  ;;  %907 = vmatpush.msra.mxu3 %v438_v58  ;;  %v473_v57 = vld [vmem:[#allocation2 + $0xaf8] sm:$0xff]  ;;  %v488_v58 = vld [vmem:[#allocation2 + $0xb70] sm:$0xff] }
  0x9e   :  { %849 = vmatpush.msra.mxu0 %v388_v60  ;;  %868 = vmatpush.msra.mxu1 %v405_v61  ;;  %v505_v60 = vld [vmem:[#allocation2 + $0xbf8] sm:$0xff]  ;;  %v455_v61 = vld [vmem:[#allocation2 + $0xa68] sm:$0xff] }
  0x9f   :  { %889 = vmatpush.msra.mxu2 %v420_v52  ;;  %908 = vmatpush.msra.mxu3 %v437_v62  ;;  %v472_v52 = vld [vmem:[#allocation2 + $0xaf0] sm:$0xff]  ;;  %v109_v62 = vadd.f32 %v108_v44, %v85_v53  ;;  %v477_v44 = vld [vmem:[#allocation2 + $0xb18] sm:$0xff]  ;;  %v494_v53 = vld [vmem:[#allocation2 + $0xba0] sm:$0xff] }
  0xa0   :  { %850 = vmatpush.msra.mxu0 %v387_v63  ;;  %869 = vmatpush.msra.mxu1 %v404_v0  ;;  %v86_v63 = vmul.f32 %v61_v54, %v61_v54  ;;  %v487_v0 = vld [vmem:[#allocation2 + $0xb68] sm:$0xff] }
  0xa1   :  { %890 = vmatpush.msra.mxu2 %v419_v1  ;;  %909 = vmatpush.msra.mxu3 %v436_v2  ;;  %v504_v1 = vld [vmem:[#allocation2 + $0xbf0] sm:$0xff]  ;;  %v454_v2 = vld [vmem:[#allocation2 + $0xa60] sm:$0xff] }
  0xa2   :  { %851 = vmatpush.msra.mxu0 %v386_v3  ;;  %870 = vmatpush.msra.mxu1 %v403_v4  ;;  %v471_v3 = vld [vmem:[#allocation2 + $0xae8] sm:$0xff]  ;;  %v486_v4 = vld [vmem:[#allocation2 + $0xb60] sm:$0xff] }
  0xa3   :  { %891 = vmatpush.msra.mxu2 %v418_v5  ;;  %910 = vmatpush.msra.mxu3 %v435_v6  ;;  %v503_v5 = vld [vmem:[#allocation2 + $0xbe8] sm:$0xff]  ;;  %v453_v6 = vld [vmem:[#allocation2 + $0xa58] sm:$0xff] }
  0xa4   :  { %852 = vmatpush.msra.mxu0 %v385_v7  ;;  %871 = vmatpush.msra.mxu1 %v402_v8  ;;  %v470_v7 = vld [vmem:[#allocation2 + $0xae0] sm:$0xff]  ;;  %v87_v8 = vmul.f32 %v62_v50, %v62_v50 }
  0xa5   :  { %892 = vmatpush.msra.mxu2 %v417_v9  ;;  %911 = vmatpush.msra.mxu3 %v434_v10  ;;  %v110_v9 = vadd.f32 %v109_v62, %v86_v63  ;;  %v485_v10 = vld [vmem:[#allocation2 + $0xb58] sm:$0xff]  ;;  %v443_v63 = vld [vmem:[#allocation2 + $0xa08] sm:$0xff] }
  0xa6   :  { %853 = vmatpush.msra.mxu0 %v384_v11  ;;  %872 = vmatpush.msra.mxu1 %v401_v12  ;;  %v502_v11 = vld [vmem:[#allocation2 + $0xbe0] sm:$0xff]  ;;  %v452_v12 = vld [vmem:[#allocation2 + $0xa50] sm:$0xff] }
  0xa7   :  { %893 = vmatpush.msra.mxu2 %v416_v14  ;;  %912 = vmatpush.msra.mxu3 %v433_v15  ;;  %v484_v14 = vld [vmem:[#allocation2 + $0xb50] sm:$0xff]  ;;  %v501_v15 = vld [vmem:[#allocation2 + $0xbd8] sm:$0xff] }
  0xa8   :  { %854 = vmatpush.msra.mxu0 %v383_v16  ;;  %873 = vmatpush.msra.mxu1 %v400_v17  ;;  %v451_v16 = vld [vmem:[#allocation2 + $0xa48] sm:$0xff]  ;;  %v468_v17 = vld [vmem:[#allocation2 + $0xad0] sm:$0xff] }
  0xa9   :  { %894 = vmatpush.msra.mxu2 %v415_v18  ;;  %913 = vmatpush.msra.mxu3 %v432_v19  ;;  %v88_v18 = vmul.f32 %v63_v55, %v63_v55  ;;  %v111_v19 = vadd.f32 %v110_v9, %v87_v8 }
  0xaa   :  { %855 = vmatpush.msra.mxu0 %v382_v20  ;;  %874 = vmatpush.msra.mxu1 %v399_v21  ;;  %v483_v20 = vld [vmem:[#allocation2 + $0xb48] sm:$0xff]  ;;  %v500_v21 = vld [vmem:[#allocation2 + $0xbd0] sm:$0xff] }
  0xab   :  { %895 = vmatpush.msra.mxu2 %v414_v25  ;;  %914 = vmatpush.msra.mxu3 %v431_v26  ;;  %v482_v25 = vld [vmem:[#allocation2 + $0xb40] sm:$0xff]  ;;  %v499_v26 = vld [vmem:[#allocation2 + $0xbc8] sm:$0xff] }
  0xac   :  { %856 = vmatpush.msra.mxu0 %v381_v27  ;;  %875 = vmatpush.msra.mxu1 %v398_v28  ;;  %v449_v27 = vld [vmem:[#allocation2 + $0xa38] sm:$0xff]  ;;  %v466_v28 = vld [vmem:[#allocation2 + $0xac0] sm:$0xff] }
  0xad   :  { %896 = vmatpush.msra.mxu2 %v413_v29  ;;  %915 = vmatpush.msra.mxu3 %v430_v24  ;;  %v1273_v29 = vld [vmem:[%s1300_s0 + $0xa0] sm:$0xff]  ;;  %v112_v24 = vadd.f32 %v111_v19, %v88_v18  ;;  %v511_v18 = vld [vmem:[#allocation2 + $0xc28] sm:$0xff] }
  0xae   :  { %857 = vmatpush.msra.mxu0 %v380_v32  ;;  %876 = vmatpush.msra.mxu1 %v397_v33  ;;  %v481_v32 = vld [vmem:[#allocation2 + $0xb38] sm:$0xff]  ;;  %v498_v33 = vld [vmem:[#allocation2 + $0xbc0] sm:$0xff]  ;;  %v89_v59 = vmul.f32 %v1273_v29, %v1273_v29 }
  0xaf   :  { %897 = vmatpush.msra.mxu2 %v412_v34  ;;  %916 = vmatpush.msra.mxu3 %v429_v35  ;;  %v465_v34 = vld [vmem:[#allocation2 + $0xab8] sm:$0xff]  ;;  %v480_v35 = vld [vmem:[#allocation2 + $0xb30] sm:$0xff]  ;;  %v510_v19 = vld [vmem:[#allocation2 + $0xc20] sm:$0xff] }
  0xb0   :  { %858 = vmatpush.msra.mxu0 %v379_v39  ;;  %877 = vmatpush.msra.mxu1 %v396_v40  ;;  %v497_v39 = vld [vmem:[#allocation2 + $0xbb8] sm:$0xff]  ;;  %v447_v40 = vld [vmem:[#allocation2 + $0xa28] sm:$0xff]  ;;  %v113_v36 = vadd.f32 %v112_v24, %v89_v59 }
  0xb1   :  { %898 = vmatpush.msra.mxu2 %v411_v41  ;;  %917 = vmatpush.msra.mxu3 %v428_v42  ;;  %v464_v41 = vld [vmem:[#allocation2 + $0xab0] sm:$0xff]  ;;  %v1280_v42 = vld [vmem:[%s1300_s0 + $0xa8] sm:$0xff] }
  0xb2   :  { %859 = vmatpush.msra.mxu0 %v378_v43  ;;  %878 = vmatpush.msra.mxu1 %v395_v47  ;;  %v479_v43 = vld [vmem:[#allocation2 + $0xb28] sm:$0xff]  ;;  %v496_v47 = vld [vmem:[#allocation2 + $0xbb0] sm:$0xff]  ;;  %v90_v48 = vmul.f32 %v1280_v42, %v1280_v42 }
  0xb3   :  { %899 = vmatpush.msra.mxu2 %v410_v30  ;;  %918 = vmatpush.msra.mxu3 %v427_v37  ;;  %v446_v30 = vld [vmem:[#allocation2 + $0xa20] sm:$0xff]  ;;  %v463_v37 = vld [vmem:[#allocation2 + $0xaa8] sm:$0xff] }
  0xb4   :  { %860 = vmatmul.f32.vlgmr.msra.gmra.mxu0 %v60_v49  ;;  %900 = vmatmul.f32.vlgmr.msra.gmra.mxu2 %v62_v50  ;;  %v66_v49 = vld [vmem:[%s1300_s0 + $0xb0] sm:$0xff]  ;;  %v478_v50 = vld [vmem:[#allocation2 + $0xb20] sm:$0xff] }
  0xb5   :  { %924 = vmatpush.msrb.mxu0 %v457_v51  ;;  %964 = vmatpush.msrb.mxu2 %v489_v45  ;;  %v495_v51 = vld [vmem:[#allocation2 + $0xba8] sm:$0xff]  ;;  %v91_v45 = vmul.f32 %v66_v49, %v66_v49 }
  0xb6   :  { %879 = vmatpush.msra.mxu1 %v394_v46  ;;  %919 = vmatpush.msra.mxu3 %v426_v38  ;;  %v445_v46 = vld [vmem:[#allocation2 + $0xa18] sm:$0xff]  ;;  %v462_v38 = vld [vmem:[#allocation2 + $0xaa0] sm:$0xff] }
  0xb7   :  { %880 = vmatmul.f32.vlgmr.msra.gmra.mxu1 %v61_v54  ;;  %920 = vmatmul.f32.vlgmr.msra.gmra.mxu3 %v63_v55  ;;  %v114_v54 = vadd.f32 %v113_v36, %v90_v48  ;;  %v444_v55 = vld [vmem:[#allocation2 + $0xa10] sm:$0xff] }
  0xb8   :  { %925 = vmatpush.msrb.mxu0 %v456_v56  ;;  %944 = vmatpush.msrb.mxu1 %v473_v57  ;;  %v461_v56 = vld [vmem:[#allocation2 + $0xa98] sm:$0xff] }
  0xb9   :  { %965 = vmatpush.msrb.mxu2 %v488_v58  ;;  %984 = vmatpush.msrb.mxu3 %v505_v60  ;;  %v67_v57 = vld [vmem:[%s1300_s0 + $0xb8] sm:$0xff]  ;;  %v476_v58 = vld [vmem:[#allocation2 + $0xb10] sm:$0xff]  ;;  %v115_v62 = vadd.f32 %v114_v54, %v91_v45 }
  0xba   :  { %926 = vmatpush.msrb.mxu0 %v455_v61  ;;  %945 = vmatpush.msrb.mxu1 %v472_v52  ;;  %v493_v60 = vld [vmem:[#allocation2 + $0xb98] sm:$0xff]  ;;  %v68_v61 = vld [vmem:[%s1300_s0 + $0xc0] sm:$0xff]  ;;  %v92_v52 = vmul.f32 %v67_v57, %v67_v57 }
  0xbb   :  { %966 = vmatpush.msrb.mxu2 %v487_v0  ;;  %985 = vmatpush.msrb.mxu3 %v504_v1  ;;  %v460_v0 = vld [vmem:[#allocation2 + $0xa90] sm:$0xff]  ;;  %v93_v1 = vmul.f32 %v68_v61, %v68_v61 }
  0xbc   :  { %927 = vmatpush.msrb.mxu0 %v454_v2  ;;  %946 = vmatpush.msrb.mxu1 %v471_v3  ;;  %v475_v2 = vld [vmem:[#allocation2 + $0xb08] sm:$0xff]  ;;  %v492_v3 = vld [vmem:[#allocation2 + $0xb90] sm:$0xff]  ;;  %v116_v8 = vadd.f32 %v115_v62, %v92_v52 }
  0xbd   :  { %967 = vmatpush.msrb.mxu2 %v486_v4  ;;  %986 = vmatpush.msrb.mxu3 %v503_v5  ;;  %v442_v4 = vld [vmem:[#allocation2 + $0xa00] sm:$0xff]  ;;  %v459_v5 = vld [vmem:[#allocation2 + $0xa88] sm:$0xff]  ;;  %v118_v9 = vsel %vm117_vm0, %v93_v1, 0.0 }
  0xbe   :  { %928 = vmatpush.msrb.mxu0 %v453_v6  ;;  %947 = vmatpush.msrb.mxu1 %v470_v7  ;;  %v474_v6 = vld [vmem:[#allocation2 + $0xb00] sm:$0xff]  ;;  %v491_v7 = vld [vmem:[#allocation2 + $0xb88] sm:$0xff] }
  0xbf   :  { %968 = vmatpush.msrb.mxu2 %v485_v10  ;;  %987 = vmatpush.msrb.mxu3 %v502_v11  ;;  %v516_v10 = vld [vmem:[#allocation2 + $0xc50] sm:$0x7f]  ;;  %v458_v11 = vld [vmem:[#allocation2 + $0xa80] sm:$0xff] }
  0xc0   :  { %929 = vmatpush.msrb.mxu0 %v452_v12  ;;  %948 = vmatpush.msrb.mxu1 %v469_v13  ;;  %v490_v12 = vld [vmem:[#allocation2 + $0xb80] sm:$0xff]  ;;  %v515_v13 = vld [vmem:[#allocation2 + $0xc48] sm:$0xff] }
  0xc1   :  { %969 = vmatpush.msrb.mxu2 %v484_v14  ;;  %988 = vmatpush.msrb.mxu3 %v501_v15  ;;  %v119_v14 = vadd.f32 %v118_v9, %v116_v8  ;;  %v514_v15 = vld [vmem:[#allocation2 + $0xc40] sm:$0xff] }
  0xc2   :  { %930 = vmatpush.msrb.mxu0 %v451_v16  ;;  %949 = vmatpush.msrb.mxu1 %v468_v17  ;;  %v513_v16 = vld [vmem:[#allocation2 + $0xc38] sm:$0xff]  ;;  %v512_v17 = vld [vmem:[#allocation2 + $0xc30] sm:$0xff] }
  0xc3   :  { %970 = vmatpush.msrb.mxu2 %v483_v20  ;;  %989 = vmatpush.msrb.mxu3 %v500_v21  ;;  %v509_v20 = vld [vmem:[#allocation2 + $0xc18] sm:$0xff]  ;;  %v508_v21 = vld [vmem:[#allocation2 + $0xc10] sm:$0xff] }
  0xc4   :  { %931 = vmatpush.msrb.mxu0 %v450_v22  ;;  %950 = vmatpush.msrb.mxu1 %v467_v23  ;;  %v507_v22 = vld [vmem:[#allocation2 + $0xc08] sm:$0xff]  ;;  %v506_v23 = vld [vmem:[#allocation2 + $0xc00] sm:$0xff] }
  0xc5   :  { %971 = vmatpush.msrb.mxu2 %v482_v25  ;;  %990 = vmatpush.msrb.mxu3 %v499_v26 }
  0xc6   :  { %932 = vmatpush.msrb.mxu0 %v449_v27  ;;  %951 = vmatpush.msrb.mxu1 %v466_v28 }
  0xc7   :  { %972 = vmatpush.msrb.mxu2 %v481_v32  ;;  %991 = vmatpush.msrb.mxu3 %v498_v33  ;;  %v541_v26 = vpop.f32.mrf.mxu0 }
  0xc8   :  { %933 = vmatpush.msrb.mxu0 %v448_v31  ;;  %952 = vmatpush.msrb.mxu1 %v465_v34 }
  0xc9   :  { %973 = vmatpush.msrb.mxu2 %v480_v35  ;;  %992 = vmatpush.msrb.mxu3 %v497_v39 }
  0xca   :  { %934 = vmatpush.msrb.mxu0 %v447_v40  ;;  %953 = vmatpush.msrb.mxu1 %v464_v41  ;;  %v561_v25 = vpop.f32.mrf.mxu1 }
  0xcb   :  { %974 = vmatpush.msrb.mxu2 %v479_v43  ;;  %993 = vmatpush.msrb.mxu3 %v496_v47  ;;  %v562_v27 = vadd.f32 %v561_v25, %v541_v26  ;;  %v581_v28 = vpop.f32.mrf.mxu2 }
  0xcc   :  { %935 = vmatpush.msrb.mxu0 %v446_v30  ;;  %954 = vmatpush.msrb.mxu1 %v463_v37 }
  0xcd   :  { %975 = vmatpush.msrb.mxu2 %v478_v50  ;;  %994 = vmatpush.msrb.mxu3 %v495_v51 }
  0xce   :  { %936 = vmatpush.msrb.mxu0 %v445_v46  ;;  %955 = vmatpush.msrb.mxu1 %v462_v38  ;;  %v601_v24 = vpop.f32.mrf.mxu3 }
  0xcf   :  { %976 = vmatpush.msrb.mxu2 %v477_v44  ;;  %995 = vmatpush.msrb.mxu3 %v494_v53 }
  0xd0   :  { %937 = vmatpush.msrb.mxu0 %v444_v55  ;;  %956 = vmatpush.msrb.mxu1 %v461_v56 }
  0xd1   :  { %977 = vmatpush.msrb.mxu2 %v476_v58  ;;  %996 = vmatpush.msrb.mxu3 %v493_v60  ;;  %v621_v33 = vpop.f32.mrf.mxu0 }
  0xd2   :  { %938 = vmatpush.msrb.mxu0 %v443_v63  ;;  %957 = vmatpush.msrb.mxu1 %v460_v0 }
  0xd3   :  { %978 = vmatpush.msrb.mxu2 %v475_v2  ;;  %997 = vmatpush.msrb.mxu3 %v492_v3 }
  0xd4   :  { %939 = vmatpush.msrb.mxu0 %v442_v4  ;;  %958 = vmatpush.msrb.mxu1 %v459_v5  ;;  %v641_v31 = vpop.f32.mrf.mxu1  ;;  %v1044_v5 = vld [vmem:[#allocation4] ss:$0 sm:$0xff] }
  0xd5   :  { %979 = vmatpush.msrb.mxu2 %v474_v6  ;;  %998 = vmatpush.msrb.mxu3 %v491_v7  ;;  %v661_v35 = vpop.f32.mrf.mxu2 }
  0xd6   :  { %940 = vmatmul.f32.vlgmr.msrb.gmra.mxu0 %v1273_v29  ;;  %980 = vmatmul.f32.vlgmr.msrb.gmra.mxu2 %v66_v49  ;;  %v582_v29 = vadd.f32 %v581_v28, %v562_v27 }
  0xd7   :  { %1038 = vmatpush.msk.msra.mxu0 %vm520_vm1, %v516_v10  ;;  %959 = vmatpush.msrb.mxu1 %v458_v11 }
  0xd8   :  { %999 = vmatpush.msrb.mxu3 %v490_v12  ;;  %960 = vmatmul.f32.vlgmr.msrb.gmra.mxu1 %v1280_v42  ;;  %v602_v32 = vadd.f32 %v601_v24, %v582_v29  ;;  %v681_v40 = vpop.f32.mrf.mxu3 }
  0xd9   :  { %1000 = vmatmul.f32.vlgmr.msrb.gmra.mxu3 %v67_v57  ;;  %1010 = vmatpush.msra.mxu0 %v515_v13 }
  0xda   :  { %120 = vadd.xlane.f32.xlu0 %v119_v14  ;;  %v622_v59 = vadd.f32 %v621_v33, %v602_v32 }
  0xdb   :  { %1011 = vmatpush.msra.mxu0 %v514_v15 }
  0xdc   :  { %v642_v34 = vadd.f32 %v641_v31, %v622_v59 }
  0xdd   :  { %1012 = vmatpush.msra.mxu0 %v513_v16 }
  0xde   :  { %v662_v39 = vadd.f32 %v661_v35, %v642_v34 }
  0xdf   :  { %1013 = vmatpush.msra.mxu0 %v512_v17 }
  0xe0   :  { %v682_v42 = vadd.f32 %v681_v40, %v662_v39 }
  0xe1   :  { %1014 = vmatpush.msra.mxu0 %v511_v18 }
  0xe3   :  { %1015 = vmatpush.msra.mxu0 %v510_v19 }
  0xe5   :  { %1016 = vmatpush.msra.mxu0 %v509_v20 }
  0xe7   :  { %1017 = vmatpush.msra.mxu0 %v508_v21 }
  0xe9   :  { %1018 = vmatpush.msra.mxu0 %v507_v22 }
  0xeb   :  { %1019 = vmatpush.msra.mxu0 %v506_v23 }
  0xec   :  { %1039 = vmatmul.msk.f32.vlgmr.msra.gmra.mxu0 %vm117_vm0, %v68_v61 }
  0xed   :  { %v701_v41 = vpop.f32.mrf.mxu0 }
  0xee   :  { %v702_v43 = vadd.f32 %v701_v41, %v682_v42 }
  0xf0   :  { %v721_v47 = vpop.f32.mrf.mxu1 }
  0xf1   :  { %v722_v48 = vadd.f32 %v721_v47, %v702_v43 }
  0xf3   :  { %v741_v36 = vpop.f32.mrf.mxu2 }
  0xf4   :  { %v742_v30 = vadd.f32 %v741_v36, %v722_v48 }
  0xf6   :  { %v761_v37 = vpop.f32.mrf.mxu3 }
  0xf7   :  { %v762_v50 = vadd.f32 %v761_v37, %v742_v30 }
 0x10f   :  { %v781_v49 = vpop.f32.mrf.mxu0 }
 0x110   :  { %v782_v51 = vadd.f32 %v781_v49, %v762_v50 }
 0x112   :  { %v801_v45 = vpop.f32.mrf.mxu1 }
 0x113   :  { %v802_v38 = vadd.f32 %v801_v45, %v782_v51 }
 0x115   :  { %v821_v46 = vpop.f32.mrf.mxu2 }
 0x116   :  { %v822_v44 = vadd.f32 %v821_v46, %v802_v38 }
 0x118   :  { %v841_v53 = vpop.f32.mrf.mxu3 }
 0x119   :  { %v842_v55 = vadd.f32 %v841_v53, %v822_v44 }
 0x131   :  { %v861_v54 = vpop.f32.mrf.mxu0 }
 0x132   :  { %v862_v56 = vadd.f32 %v861_v54, %v842_v55 }
 0x134   :  { %v881_v57 = vpop.f32.mrf.mxu1 }
 0x135   :  { %v882_v60 = vadd.f32 %v881_v57, %v862_v56 }
 0x137   :  { %v901_v58 = vpop.f32.mrf.mxu2 }
 0x138   :  { %v902_v61 = vadd.f32 %v901_v58, %v882_v60 }
 0x13a   :  { %v921_v52 = vpop.f32.mrf.mxu3 }
 0x13b   :  { %v922_v63 = vadd.f32 %v921_v52, %v902_v61 }
 0x14d   :  { %v121_v7 = vpop.xlane.xlu0 %120 }
 0x14e   :  { %v1028_v9 = vadd.f32 %v1044_v5, %v121_v7 }
 0x153   :  { %v941_v62 = vpop.f32.mrf.mxu0 }
 0x154   :  { %v942_v0 = vadd.f32 %v941_v62, %v922_v63 }
 0x155   :  { %v961_v1 = vpop.f32.mrf.mxu1 }
 0x156   :  { %v962_v3 = vadd.f32 %v961_v1, %v942_v0 }
 0x159   :  { %v981_v2 = vpop.f32.mrf.mxu2 }
 0x15a   :  { %v982_v4 = vadd.f32 %v981_v2, %v962_v3 }
 0x15c   :  { %v1001_v6 = vpop.f32.mrf.mxu3 }
 0x15d   :  { %v1002_v8 = vadd.f32 %v1001_v6, %v982_v4 }
 0x169   :  { %v1021_v10 = vpop.f32.mrf.mxu0 }
 0x16a   :  { %v1022_v11 = vadd.f32 %v1021_v10, %v1002_v8 }
 0x16c   :  { %v1029_v12 = vadd.f32 %v1028_v9, %v1022_v11 }
 0x16e   :  { %v1030_v13 = vmax.f32 %v1029_v12, 0.0 }
 0x170   :  { %1031 = vst [vmem:[%s1303_s3] sm:$0xff] %v1030_v13 }
 0x171   :  { %1036 = vsyncpa [#allocation3], 1 }
 0x172   :  { %1037 = vsyncpa [#allocation5], 1 }

</bundles_post_ra>
